<compile_context>
chip_gen: v6e
topology: v6e:2x2x1
jax: 0.10.0
libtpu: 0.0.40
codegen_flags: <defaults>
</compile_context>

<pallas_src>
import functools

import jax
import jax.numpy as jnp
import numpy as np
from jax import lax
from jax.experimental import pallas as pl
from jax.experimental.pallas import tpu as pltpu


def _gram_kernel(x_ref, wtp_ref, btp_ref, w1_ref, b1_ref, o_ref,
                 *, embed, c_emb, nb):
    """Non-softmax path (covers both the 'gram' and 'pixel w/o softmax' branches,
    which are mathematically identical up to re-association).

      f0[i,j] = sum_p phi[i,p] * g[j,p]
      out     = x + (w1/(HW)) @ (f0^T-contract) @ theta + b1
    w1_ref already has 1/(H*W) folded in (b1 is NOT scaled).
    """
    for b in range(nb):                                   # static unroll over batch block
        x = x_ref[b]                                      # (C, HW) f32
        if embed:
            tp = jnp.dot(wtp_ref[...], x,
                         preferred_element_type=jnp.float32) + btp_ref[...]
            theta = tp[:c_emb]
            phi = tp[c_emb:]
        else:
            theta = x
            phi = x
        g = x
        # f0[i, j] = sum_p phi[i, p] * g[j, p]  -> (c_emb, C); K = HW -> bf16 MXU operands.
        f0 = lax.dot_general(phi.astype(jnp.bfloat16), g.astype(jnp.bfloat16),
                             (((1,), (1,)), ((), ())),
                             preferred_element_type=jnp.float32)
        # Re-association: m[o, i] = sum_j w1[o, j] * f0[i, j]  -> (C_out, c_emb) (tiny).
        m = lax.dot_general(w1_ref[...], f0, (((1,), (1,)), ((), ())),
                            preferred_element_type=jnp.float32)
        res = jnp.dot(m, theta, preferred_element_type=jnp.float32) + b1_ref[...]
        o_ref[b] = x + res


def _softmax_kernel(x_ref, wtp_ref, btp_ref, w1_ref, b1_ref, o_ref,
                    *, embed, c_emb, nb, n_q, tq, inv_sqrt_c):
    """Softmax (pixel-attention) path, tiled over the query-pixel axis.

      F[p,q] = sum_i theta[i,p] * phi[i,q]   (theta pre-scaled by 1/sqrt(C))
      P      = softmax_q(F)
      f[i,p] = sum_q P[p,q] * g[i,q]
      out    = x + w1 @ f + b1
    """
    for b in range(nb):                                   # static unroll over batch block
        x = x_ref[b]                                      # (C, HW) f32
        if embed:
            # theta weights/bias already scaled by 1/sqrt(C) on the host.
            tp = jnp.dot(wtp_ref[...], x,
                         preferred_element_type=jnp.float32) + btp_ref[...]
            theta = tp[:c_emb]
            phi = tp[c_emb:]
        else:
            theta = x * inv_sqrt_c
            phi = x
        g_bf = x.astype(jnp.bfloat16)
        theta_bf = theta.astype(jnp.bfloat16)
        phi_bf = phi.astype(jnp.bfloat16)
        for qb in range(n_q):                             # static flash-style query tiling
            q0 = qb * tq
            th_blk = theta_bf[:, q0:q0 + tq]              # (c_emb, TQ)
            # F[p, q] = sum_i theta[i, p] * phi[i, q] -> (TQ, HW), f32 accumulation.
            f = lax.dot_general(th_blk, phi_bf, (((0,), (0,)), ((), ())),
                                preferred_element_type=jnp.float32)
            # Row softmax over the key axis; max/exp/sum kept in f32 (v5e-safe).
            mrow = jnp.max(f, axis=-1, keepdims=True)
            e = jnp.exp(f - mrow)
            ssum = jnp.sum(e, axis=-1, keepdims=True)
            probs = e * pl.reciprocal(ssum, approx=True)
            # f2[i, p] = sum_q P[p, q] * g[i, q] -> (C, TQ); K = HW -> bf16 MXU operands.
            f2 = lax.dot_general(g_bf, probs.astype(jnp.bfloat16),
                                 (((1,), (1,)), ((), ())),
                                 preferred_element_type=jnp.float32)
            res = jnp.dot(w1_ref[...], f2,
                          preferred_element_type=jnp.float32) + b1_ref[...]
            o_ref[b, :, q0:q0 + tq] = x[:, q0:q0 + tq] + res


def _divisors(n):
    return [d for d in range(1, n + 1) if n % d == 0]


def denoising_forward(x, params, *, softmax, embed):
    """Pallas implementation of DenoisingModule.forward. x: (N, C, H, W) f32."""
    wt, bt, wp, bp, w1, b1 = params
    N, C, H, W = x.shape
    P = H * W
    c_out = w1.shape[0]
    assert c_out == C, "residual add (x + conv1(f)) requires out_channels == in_channels"
    c_emb = int(wt.shape[0]) if embed else C

    xf = x.reshape(N, C, P).astype(jnp.float32)

    inv_hw = 1.0 / float(P)
    inv_sqrt_c = 1.0 / float(np.sqrt(C))

    # Fold constant scales into host-side weight prep (free):
    #   non-softmax: the 1/(H*W) on f is folded into w1 (NOT into b1).
    #   softmax:     the 1/sqrt(C) on the logits is folded into theta's weight AND bias.
    if softmax:
        w1k = w1.astype(jnp.float32)
    else:
        w1k = (w1.astype(jnp.float32) * inv_hw)
    b1k = b1.reshape(c_out, 1).astype(jnp.float32)

    if embed:
        wt_k = wt.astype(jnp.float32)
        bt_k = bt.astype(jnp.float32)
        if softmax:
            wt_k = wt_k * inv_sqrt_c
            bt_k = bt_k * inv_sqrt_c
        # Fuse theta/phi projections into one matmul.
        wtp = jnp.concatenate([wt_k, wp.astype(jnp.float32)], axis=0)        # (2*c_emb, C)
        btp = jnp.concatenate([bt_k, bp.astype(jnp.float32)], axis=0).reshape(2 * c_emb, 1)
    else:
        wtp = jnp.zeros((1, 1), jnp.float32)   # dummies (unused when embed=False)
        btp = jnp.zeros((1, 1), jnp.float32)

    # --- batch blocking: B elements per grid step ---------------------------------
    # Conservative VMEM budget (fits default scoped VMEM on v5e/v6e/v7x): x and out
    # blocks are double-buffered -> ~ 2*(in+out)*B*C*P*4 bytes.
    vmem_budget = 8 * 1024 * 1024
    bytes_per_elem = 4 * C * P * 4
    b_cap = max(1, min(8, vmem_budget // max(1, bytes_per_elem)))
    divs = _divisors(N)
    b_block = max(d for d in divs if d <= b_cap)
    # Keep >= 2 grid steps when N > 1 so both v7x TensorCores get work.
    if N > 1 and N // b_block < 2:
        b_block = max(d for d in divs if d <= max(1, N // 2))
    grid_n = N // b_block

    if softmax:
        # Query-block size for the attention matrix (bounds VMEM to O(tq * HW)).
        tq = P if P <= 512 else max(d for d in _divisors(P) if d <= 512)
        n_q = P // tq
        kernel = functools.partial(_softmax_kernel, embed=embed, c_emb=c_emb,
                                   nb=b_block, n_q=n_q, tq=tq,
                                   inv_sqrt_c=inv_sqrt_c)
    else:
        kernel = functools.partial(_gram_kernel, embed=embed, c_emb=c_emb, nb=b_block)

    out = pl.pallas_call(
        kernel,
        out_shape=jax.ShapeDtypeStruct((N, C, P), jnp.float32),
        grid_spec=pltpu.PrefetchScalarGridSpec(
            num_scalar_prefetch=0,
            grid=(grid_n,),
            in_specs=[
                pl.BlockSpec((b_block, C, P), lambda n: (n, 0, 0)),   # x block
                pl.BlockSpec(wtp.shape, lambda n: (0, 0)),            # fused theta/phi weight
                pl.BlockSpec(btp.shape, lambda n: (0, 0)),            # fused theta/phi bias
                pl.BlockSpec((c_out, C), lambda n: (0, 0)),           # conv1 weight (pre-scaled)
                pl.BlockSpec((c_out, 1), lambda n: (0, 0)),           # conv1 bias
            ],
            out_specs=pl.BlockSpec((b_block, C, P), lambda n: (n, 0, 0)),
        ),
        compiler_params=pltpu.CompilerParams(dimension_semantics=("parallel",)),
    )(xf, wtp, btp, w1k, b1k)
    return out.reshape(N, C, H, W)


def reference(x, params, *, softmax, embed):
    """Pure-JAX reference mirroring the PyTorch forward (for validation)."""
    wt, bt, wp, bp, w1, b1 = params
    N, C, H, W = x.shape
    hp = lax.Precision.HIGHEST
    if embed:
        theta = jnp.einsum('oi,nihw->nohw', wt, x, precision=hp) + bt.reshape(1, -1, 1, 1)
        phi = jnp.einsum('oi,nihw->nohw', wp, x, precision=hp) + bp.reshape(1, -1, 1, 1)
        g = x
    else:
        theta, phi, g = x, x, x
    if C > H * W or softmax:
        f = jnp.einsum('niab,nicd->nabcd', theta, phi, precision=hp)
        if softmax:
            f = f / jnp.sqrt(float(C))
            f = jax.nn.softmax(f.reshape(N, H * W, H * W), axis=-1).reshape(f.shape)
        f = jnp.einsum('nabcd,nicd->niab', f, g, precision=hp)
    else:
        f0 = jnp.einsum('nihw,njhw->nij', phi, g, precision=hp)
        f = jnp.einsum('nij,nihw->njhw', f0, theta, precision=hp)
    if not softmax:
        f = f / (H * W)
    result = jnp.einsum('oi,nihw->nohw', w1, f, precision=hp) + b1.reshape(1, -1, 1, 1)
    return x + result


if __name__ == "__main__":
    N, C, H, W = 2, 4, 16, 16   # in_channels = out_channels = 4
    key = jax.random.PRNGKey(0)
    k = jax.random.split(key, 7)
    scale = 0.2
    wt = jax.random.normal(k[0], (C, C), jnp.float32) * scale   # theta: Conv2d(C, C, 1)
    bt = jax.random.normal(k[1], (C,), jnp.float32) * scale
    wp = jax.random.normal(k[2], (C, C), jnp.float32) * scale   # phi:   Conv2d(C, C, 1)
    bp = jax.random.normal(k[3], (C,), jnp.float32) * scale
    w1 = jax.random.normal(k[4], (C, C), jnp.float32) * scale   # conv1: Conv2d(C, C, 1)
    b1 = jax.random.normal(k[5], (C,), jnp.float32) * scale
    x = jax.random.normal(k[6], (N, C, H, W), jnp.float32)
    params = (wt, bt, wp, bp, w1, b1)

    # TODO(synk): the PyTorch code calls torch.sqrt(self.in_channels) on a python
    # int (raises) and F.softmax with no dim; we implement the mathematically
    # intended scaled softmax over the key-pixel axis instead.
    configs = [
        dict(softmax=False, embed=True),    # gram path (in_channels <= H*W)
        dict(softmax=False, embed=False),
        dict(softmax=True, embed=True),     # pixel-attention path with softmax
    ]
    for cfg in configs:
        out = denoising_forward(x, params, **cfg)
        out = jax.block_until_ready(out)
        ref = reference(x, params, **cfg)
        # Tolerance loosened slightly: the HW-contraction matmuls use bf16 MXU
        # operands (f32 accumulation) per the perf review.
        np.testing.assert_allclose(np.asarray(out), np.asarray(ref),
                                   rtol=1e-2, atol=1e-2)
    print("KERNEL_OK")
</pallas_src>

<mosaic_0001>
module attributes {stable_mosaic.version = 11 : i64} {
  func.func @_gram_kernel(%arg0: i32, %arg1: memref<1x4x256xf32, #tpu.memory_space<vmem>>, %arg2: memref<8x4xf32, #tpu.memory_space<vmem>>, %arg3: memref<8x1xf32, #tpu.memory_space<vmem>>, %arg4: memref<4x4xf32, #tpu.memory_space<vmem>>, %arg5: memref<4x1xf32, #tpu.memory_space<vmem>>, %arg6: memref<1x4x256xf32, #tpu.memory_space<vmem>>) attributes {dimension_semantics = [#tpu.dimension_semantics<parallel>], iteration_bounds = array<i64: 2>, scalar_prefetch = 0 : i64, scratch_operands = 0 : i64, tpu.core_type = #tpu.core_type<tc>, window_params = [{transform_indices = @transform_0, window_bounds = array<i64: 1, 4, 256>}, {pipeline_mode = #tpu.pipeline_mode<synchronous>, transform_indices = @transform_1, window_bounds = array<i64: 8, 4>}, {pipeline_mode = #tpu.pipeline_mode<synchronous>, transform_indices = @transform_2, window_bounds = array<i64: 8, 1>}, {pipeline_mode = #tpu.pipeline_mode<synchronous>, transform_indices = @transform_3, window_bounds = array<i64: 4, 4>}, {pipeline_mode = #tpu.pipeline_mode<synchronous>, transform_indices = @transform_4, window_bounds = array<i64: 4, 1>}, {transform_indices = @transform_5, window_bounds = array<i64: 1, 4, 256>}]} {
    %c0 = arith.constant 0 : index
    %c0_0 = arith.constant 0 : index
    %c0_1 = arith.constant 0 : index
    %0 = vector.load %arg1[%c0, %c0_0, %c0_1] : memref<1x4x256xf32, #tpu.memory_space<vmem>>, vector<1x4x256xf32>
    %1 = vector.shape_cast %0 : vector<1x4x256xf32> to vector<4x256xf32>
    %c0_2 = arith.constant 0 : index
    %c0_3 = arith.constant 0 : index
    %2 = vector.load %arg2[%c0_2, %c0_3] : memref<8x4xf32, #tpu.memory_space<vmem>>, vector<8x4xf32>
    %cst = arith.constant dense<0.000000e+00> : vector<8x256xf32>
    %3 = tpu.matmul %2, %1, %cst {dimension_numbers = #tpu.dot_dimension_numbers<[1], [0], [0], [1], [0, 0, 1, 1], [], []>} : vector<8x4xf32>, vector<4x256xf32>, vector<8x256xf32> -> vector<8x256xf32>
    %c0_4 = arith.constant 0 : index
    %c0_5 = arith.constant 0 : index
    %4 = vector.load %arg3[%c0_4, %c0_5] : memref<8x1xf32, #tpu.memory_space<vmem>>, vector<8x1xf32>
    %5 = vector.broadcast %4 : vector<8x1xf32> to vector<8x256xf32>
    %6 = arith.addf %3, %5 : vector<8x256xf32>
    %7 = vector.extract_strided_slice %6 {offsets = [0, 0], sizes = [4, 256], strides = [1, 1]} : vector<8x256xf32> to vector<4x256xf32>
    %8 = vector.extract_strided_slice %6 {offsets = [4, 0], sizes = [4, 256], strides = [1, 1]} : vector<8x256xf32> to vector<4x256xf32>
    %9 = arith.truncf %8 : vector<4x256xf32> to vector<4x256xbf16>
    %10 = arith.truncf %1 : vector<4x256xf32> to vector<4x256xbf16>
    %cst_6 = arith.constant dense<0.000000e+00> : vector<4x4xf32>
    %11 = tpu.matmul %9, %10, %cst_6 {dimension_numbers = #tpu.dot_dimension_numbers<[1], [1], [0], [0], [0, 0, 1, 0], [], []>} : vector<4x256xbf16>, vector<4x256xbf16>, vector<4x4xf32> -> vector<4x4xf32>
    %c0_7 = arith.constant 0 : index
    %c0_8 = arith.constant 0 : index
    %12 = vector.load %arg4[%c0_7, %c0_8] : memref<4x4xf32, #tpu.memory_space<vmem>>, vector<4x4xf32>
    %cst_9 = arith.constant dense<0.000000e+00> : vector<4x4xf32>
    %13 = tpu.matmul %12, %11, %cst_9 {dimension_numbers = #tpu.dot_dimension_numbers<[1], [1], [0], [0], [0, 0, 1, 0], [], []>} : vector<4x4xf32>, vector<4x4xf32>, vector<4x4xf32> -> vector<4x4xf32>
    %cst_10 = arith.constant dense<0.000000e+00> : vector<4x256xf32>
    %14 = tpu.matmul %13, %7, %cst_10 {dimension_numbers = #tpu.dot_dimension_numbers<[1], [0], [0], [1], [0, 0, 1, 1], [], []>} : vector<4x4xf32>, vector<4x256xf32>, vector<4x256xf32> -> vector<4x256xf32>
    %c0_11 = arith.constant 0 : index
    %c0_12 = arith.constant 0 : index
    %15 = vector.load %arg5[%c0_11, %c0_12] : memref<4x1xf32, #tpu.memory_space<vmem>>, vector<4x1xf32>
    %16 = vector.broadcast %15 : vector<4x1xf32> to vector<4x256xf32>
    %17 = arith.addf %14, %16 : vector<4x256xf32>
    %18 = arith.addf %1, %17 : vector<4x256xf32>
    %c0_13 = arith.constant 0 : index
    %c0_14 = arith.constant 0 : index
    %c0_15 = arith.constant 0 : index
    %19 = vector.load %arg6[%c0_13, %c0_14, %c0_15] : memref<1x4x256xf32, #tpu.memory_space<vmem>>, vector<1x4x256xf32>
    %20 = vector.shape_cast %19 : vector<1x4x256xf32> to vector<4x256xf32>
    %21 = vector.shape_cast %18 : vector<4x256xf32> to vector<1x4x256xf32>
    tpu.vector_store %arg6[%c0_13, %c0_14, %c0_15], %21 {strides = array<i32>} : memref<1x4x256xf32, #tpu.memory_space<vmem>>, vector<1x4x256xf32>,
    return
  }
  func.func @transform_0(%arg0: i32) -> (i32, i32, i32) {
    %c0_i32 = arith.constant 0 : i32
    %c0_i32_0 = arith.constant 0 : i32
    %c0_i32_1 = arith.constant 0 : i32
    return %arg0, %c0_i32, %c0_i32_0 : i32, i32, i32
  }
  func.func @transform_1(%arg0: i32) -> (i32, i32) {
    %c0_i32 = arith.constant 0 : i32
    %c0_i32_0 = arith.constant 0 : i32
    %c0_i32_1 = arith.constant 0 : i32
    return %c0_i32, %c0_i32_0 : i32, i32
  }
  func.func @transform_2(%arg0: i32) -> (i32, i32) {
    %c0_i32 = arith.constant 0 : i32
    %c0_i32_0 = arith.constant 0 : i32
    %c0_i32_1 = arith.constant 0 : i32
    return %c0_i32, %c0_i32_0 : i32, i32
  }
  func.func @transform_3(%arg0: i32) -> (i32, i32) {
    %c0_i32 = arith.constant 0 : i32
    %c0_i32_0 = arith.constant 0 : i32
    %c0_i32_1 = arith.constant 0 : i32
    return %c0_i32, %c0_i32_0 : i32, i32
  }
  func.func @transform_4(%arg0: i32) -> (i32, i32) {
    %c0_i32 = arith.constant 0 : i32
    %c0_i32_0 = arith.constant 0 : i32
    %c0_i32_1 = arith.constant 0 : i32
    return %c0_i32, %c0_i32_0 : i32, i32
  }
  func.func @transform_5(%arg0: i32) -> (i32, i32, i32) {
    %c0_i32 = arith.constant 0 : i32
    %c0_i32_0 = arith.constant 0 : i32
    %c0_i32_1 = arith.constant 0 : i32
    return %arg0, %c0_i32, %c0_i32_0 : i32, i32, i32
  }
}

</mosaic_0001>

<bundles_post_ra>
// kernel: tpu_custom_call.1
= control target key start
LH: loop header
LB: loop body
LE: loop exit
PB: predicated region body
PF: predicated region fallthrough
CT: control target
= control target key end

     0   :  { %10 = vsyncpa [#allocation3], 0  ;;  %s884_s0 = inlined_call_operand.vmem [shape: f32[2,4,256], index: 0, kind: input, shape index: {}]   ;;  %s885_s1 = inlined_call_operand.vmem [shape: f32[8,4], index: 1, kind: input, shape index: {}]   ;;  %s886_s2 = inlined_call_operand.vmem [shape: f32[8,1], index: 2, kind: input, shape index: {}]   ;;  %s887_s3 = inlined_call_operand.vmem [shape: f32[4,4], index: 3, kind: input, shape index: {}]   ;;  %s888_s4 = inlined_call_operand.vmem [shape: f32[4,1], index: 4, kind: input, shape index: {}]   ;;  %s889_s5 = inlined_call_operand.hbm [shape: f32[2,4,256], index: 5, kind: output, shape index: {}]  }
   0x1   :  { %12 = vsyncpa [#allocation3 + $0x1], 0  ;;  %s777_s18 = smov 0   ;;  %s779_s19 = smov 0  }
   0x2   :  { %s781_s20 = smov 0   ;;  %s783_s21 = smov 0  }
   0x3 LB: > { %s798_s22 = sadd.s32 4294967295, %s741_s21   ;;  %s608_s23 = sadd.s32 4294967294, %s741_s21   ;;  %s741_s21 = sphi %s783_s21, %s895_s21   ;;  %s737_s20 = sphi %s781_s20, %s894_s20   ;;  %s733_s19 = sphi %s779_s19, %s893_s19   ;;  %s729_s18 = sphi %s777_s18, %s892_s18  }
   0x4   : > { %s802_s24 = sadd.s32 1, %s741_s21   ;;  %s135_s25 = sadd.s32 1, %s737_s20 }
   0x5   : > { %s132_s26 = ssub.s32 %s741_s21, %s802_s24  ;;  %p145_p0 = scmp.ne.s32.totalorder %s737_s20, %s733_s19 }
   0x6   : > { %p133_p1 = scmp.eq.s32.totalorder %s132_s26, 0  ;;  %p146_p2 = scmp.eq.s32.totalorder %s798_s22, 1 }
   0x7   : > { %p151_p3 = scmp.ne.s32.totalorder %s733_s19, %s729_s18  ;;  %p152_p4 = scmp.eq.s32.totalorder %s608_s23, 1 }
   0x8   : > { %s813_s27 = scalar_select %p133_p1, %s737_s20, %s135_s25  }
   0x9   : > { %p815_p5 = por %p146_p2, %p145_p0  ;;  %p819_p6 = por %p152_p4, %p151_p3 }
   0xa   : > { %p611_p7 = scmp.ge.s32.totalorder %s741_s21, 1  ;;  %p190_p8 = scmp.lt.s32.totalorder %s741_s21, 3 }
   0xc   : > { %p191_p9 = pnand %p611_p7, %p190_p8 }
   0xd   : > { %p218_p10 = scmp.lt.s32.totalorder (!%p191_p9), %s798_s22, 1  ;;  %s215_s23 = sand.u32 (!%p191_p9), 1, %s733_s19  }
   0xe   : > { %194 = sbr.rel (%p191_p9) target bundleno = 833 (0x341), region = 40  ;;  %s612_s25 = sshll.u32 (!%p191_p9), %s215_s23, 3 }
   0xf   : > { %s629_s26 = sshll.u32 (!%p191_p9), %s798_s22, 7  ;;  %s217_s30 = scalar_lea.vmem (!%p191_p9), [#allocation2], %s612_s25 }
  0x10   : > { %s549_s6 = sshll.u32 (!%p191_p9), %s217_s30, 4  ;;  %s547_s9 = scalar_lea.hbm (!%p191_p9), %s889_s5, %s629_s26  ;;  %s550_s6 = int_to_ptr.vmem [resolvable:$true] %s549_s6 }
  0x11   : > { %s681_s11 = scalar_lea.vmem (!%p191_p9), %s550_s6, 128  ;;  %s746_s12 = smov (!%p191_p9), [#allocation2]  }
  0x12   : > { %p682_p11 = scmp.ne.s32.totalorder (!%p191_p9), %s550_s6, %s681_s11 }
  0x13   : > { %v743_v0 = vmov 0.0   ;;  %v744_v1 = vmov 0   ;;  %v226_v2 = vld [vmem:[%s886_s2] sm:$0xff]  ;;  %s219_s7 = scalar_select %p218_p10, %s798_s22, 1  ;;  %vm238_vm0 = vcmask 1043456   ;;  %vm234_vm1 = vcmask 31744  }
  0x14   : > { %307 = vmatprep.mubr.f32.mxu0 %v743_v0  ;;  %679 = vset.pattern.permute.xlu0 %v744_v1  ;;  %v442_v3 = vld [vmem:[%s888_s4] sm:$0xf]  ;;  %vm745_vm2 = vmmov 0   ;;  %p683_p12 = pnand %p682_p11, %p815_p5 }
  0x15   : > { %229 = vperm.xlu0 %679, %v226_v2   ;;  %s628_s10 = sshll.u32 %s219_s7, 3  ;;  %v225_v6 = vld [vmem:[%s885_s1] sm:$0xff] }
  0x16   : > { %s222_s13 = scalar_lea.vmem %s884_s0, %s628_s10  ;;  %v365_v19 = vld [vmem:[%s887_s3] sm:$0xf]  ;;  %s535_s10 = scalar_lea.sflag [#allocation3], %s215_s23 }
  0x17   : > { %v224_v4 = vld [vmem:[%s222_s13] sm:$0xff]  ;;  %p684_p13 = pneg %p683_p12  ;;  %s685_s13 = sshll.u32 %s746_s12, 4  ;;  %s686_s13 = int_to_ptr.vmem [resolvable:$false] %s685_s13 }
  0x18   : > { %v233_v5 = vcombine.high %v224_v4, %v224_v4  ;;  %v317_v8 = vpack.c.bf16 %v224_v4, %v224_v4  ;;  %s687_s22 = scalar_lea.vmem %s686_s13, 256  ;;  %p688_p0 = scmp.lt.s32.totalorder %s550_s6, %s686_s13 }
  0x19   : > { %445 = vperm.xlu0 %679, %v442_v3   ;;  %p689_p1 = scmp.lt.s32.totalorder %s687_s22, %s681_s11 }
  0x1a   : > { %615 = vmatprep.subr.msk.mxu0 %vm238_vm0, %v233_v5  ;;  %v318_v7 = vpack.c.bf16 %v233_v5, %v233_v5 }
  0x1b   : > { %616 = vmatpush1.msk.msra.mxu0 %vm238_vm0, %v224_v4  ;;  %p690_p2 = por %p689_p1, %p688_p0 }
  0x1c   : > { %617 = vmatmul.mubr.msk.f32.vlgmr.msra.gmra.mxu0 %vm234_vm1, %v225_v6  ;;  %632 = vmatprep.subr.mxu0 %v743_v0 }
  0x1d   : > { %339 = vmatprep.subr.bf16.mxu1 %v318_v7  ;;  %634 = vmatprep.mubr.msk.f32.mxu0 %vm745_vm2, %v743_v0  ;;  %p691_p3 = pnand %p690_p2, %p684_p13 }
  0x1e   : > { %340 = vmatpush1.bf16.xpose.msra.mxu1 %v317_v8 }
  0x90   : > { %v230_v9 = vpop.permute.xlu0 %229 }
  0x94   : > { %v446_v26 = vpop.permute.xlu0 %445 }
  0xdc   : > { %v309_v10 = vpop.f32.mrf.mxu0 }
  0xdd   : > { %v310_v11 = vadd.f32 %v309_v10, %v230_v9 }
  0xde   : > { %v311_v12 = vpop.f32.mrf.mxu0 }
  0xdf   : > { %v312_v13 = vadd.f32 %v311_v12, %v230_v9  ;;  %v314_v14 = vpack.c.bf16 %v310_v11, %v310_v11 }
  0xe1   : > { %v315_v15 = vpack.c.bf16 %v312_v13, %v312_v13  ;;  %v321_v17 = vrot.slane %v314_v14, 2 }
  0xe3   : > { %v322_v16 = vrot.slane %v315_v15, 2 }
  0xe5   : > { %357 = vmatprep.mubr.bf16.mxu1 %v322_v16 }
  0xe6   : > { %358 = vmatmul.mubr.bf16.vlgmr.msra.gmra.mxu1 %v321_v17 }
 0x1a6   : > { %v359_v18 = vpop.f32.mrf.mxu1 }
 0x1a7   : > { %633 = vmatpush3.xpose.msk.msra.mxu0 %vm234_vm1, %v359_v18 }
 0x1a8   : > { %v361_v20 = vpop.f32.mrf.mxu1  ;;  %620 = vmatprep.subr.msk.mxu0 %vm238_vm0, %v312_v13 }
 0x1aa   : > { %v362_v21 = vpop.f32.mrf.mxu1  ;;  %635 = vmatmul.mubr.msk.f32.vlgmr.msra.gmra.mxu0 %vm234_vm1, %v365_v19 }
 0x1ab   : > { %621 = vmatpush1.msk.msra.mxu0 %vm238_vm0, %v310_v11  ;;  %521 = vmatprep.mubr.f32.mxu0 %v743_v0 }
 0x1ac   : > { %v363_v22 = vpop.f32.mrf.mxu1 }
 0x26a   : > { %v438_v23 = vpop.f32.mrf.mxu0 }
 0x26b   : > { %622 = vmatmul.mubr.msk.f32.vlgmr.msra.gmra.mxu0 %vm234_vm1, %v438_v23 }
 0x26c   : > { %v636_v24 = vpop.f32.mrf.mxu0 }
 0x32b   : > { %v523_v25 = vpop.f32.mrf.mxu0 }
 0x32c   : > { %v524_v28 = vadd.f32 %v523_v25, %v446_v26 }
 0x32d   : > { %v525_v27 = vpop.f32.mrf.mxu0 }
 0x32e   : > { %v526_v29 = vadd.f32 %v525_v27, %v446_v26 }
 0x330   : > { %v530_v30 = vcombine.low %v524_v28, %v526_v29 }
 0x332   : > { %v532_v31 = vadd.f32 %v530_v30, %v224_v4 }
 0x334   : > { %533 = vst [vmem:[%s217_s30] sm:$0xff] %v532_v31 }
 0x335   : > { %694 = shalt.err (!%p691_p3)
}
 0x336   : > { %s695_s14 = scalar_lea.hbm %s547_s9, 128  ;;  %s699_s17 = scalar_lea.hbm %s889_s5, 256 }
 0x337   : > { %p696_p4 = scmp.ne.s32.totalorder %s547_s9, %s695_s14  ;;  %p700_p9 = scmp.lt.s32.totalorder %s547_s9, %s889_s5 }
 0x338   : > { %p701_p10 = scmp.lt.s32.totalorder %s699_s17, %s695_s14 }
 0x339   : > { %p697_p7 = pnand %p696_p4, %p815_p5 }
 0x33a   : > { %p702_p11 = por %p701_p10, %p700_p9 }
 0x33b   : > { %p698_p8 = pneg %p697_p7 }
 0x33d   : > { %p703_p12 = pnand %p702_p11, %p698_p8 }
 0x33f   : > { %706 = shalt.err (!%p703_p12)
}
 0x340   : > { %637 = dma.vmem_to_hbm [thread:$0]  (%p815_p5), %s550_s6, 128, %s547_s9, %s535_s10  }
 0x341 PF: > { %p643_p13 = scmp.ge.s32.totalorder %s741_s21, 2  ;;  %s561_s26 = sand.u32 1, %s729_s18  }
 0x342   : > { %s562_s30 = scalar_lea.sflag [#allocation3], %s561_s26 }
 0x343   : > { %p640_p0 = pnand %p643_p13, %p819_p6 }
 0x345   : > { %p641_p1 = pneg %p640_p0 }
 0x347   : > { %724 = dma.done.wait (%p641_p1), %s562_s30, 128  }
 0x348   : > { %726 = vsyncadd (%p641_p1), %s562_s30, 4294967168  ;;  %p15_p2 = scmp.ge.s32.totalorder %s802_s24, 4   ;;  %s892_s18 = smov %s733_s19 }
 0x349   : > { %s893_s19 = smov %s737_s20  ;;  %s894_s20 = smov %s813_s27 }
 0x34a   : > { %s895_s21 = smov %s802_s24  ;;  %17 = sbr.rel (!%p15_p2) target bundleno = 3 (0x3), region = 75 }
 0x34f   :  { %567 = vsyncpa [#allocation3], 1 }
 0x350   :  { %569 = vsyncpa [#allocation3 + $0x1], 1 }

</bundles_post_ra>
